<compile_context>
chip_gen: v5e
topology: v5e:2x2
jax: 0.10.0
libtpu: 0.0.40
codegen_flags: <defaults>
</compile_context>

<pallas_src>
import functools

import jax
import jax.numpy as jnp
from jax import lax
from jax.experimental import pallas as pl
from jax.experimental.pallas import tpu as pltpu


def _vmem():
    return pl.BlockSpec(memory_space=pltpu.MemorySpace.VMEM)


def _smem():
    return pl.BlockSpec(memory_space=pltpu.MemorySpace.SMEM)


# ----------------------------------------------------------------------------
# Shared GRU update (PyTorch GRUCell gate order r, z, n).  H is a multiple of
# 128 so the gate lane-slices are (8,128)-tile aligned.
# ----------------------------------------------------------------------------
def _gru_update(gi, gh, h, H):
    r = jax.nn.sigmoid(gi[:, :H] + gh[:, :H])
    z = jax.nn.sigmoid(gi[:, H:2 * H] + gh[:, H:2 * H])
    n = jnp.tanh(gi[:, 2 * H:] + r * gh[:, 2 * H:])
    return (1.0 - z) * n + z * h


# ----------------------------------------------------------------------------
# (1) Fused input-gate precompute: ONE bf16 matmul [T*B,E] @ [E, 3He+3He+3Hd],
#     sliced in-kernel into three lane-dense time-major slabs.
# ----------------------------------------------------------------------------
def _gi_kernel(emb_ref, w_ref, b_ref, of_ref, ob_ref, od_ref, *, T, B, He3, Hd3):
    y = jnp.dot(emb_ref[...], w_ref[...],
                preferred_element_type=jnp.float32) + b_ref[...]
    of_ref[...] = y[:, :He3].reshape(T, B, He3)
    ob_ref[...] = y[:, He3:2 * He3].reshape(T, B, He3)
    od_ref[...] = y[:, 2 * He3:].reshape(T, B, Hd3)


def pallas_input_gates(emb_flat_tm, params, T, B, He, Hd):
    He3, Hd3 = 3 * He, 3 * Hd
    return pl.pallas_call(
        functools.partial(_gi_kernel, T=T, B=B, He3=He3, Hd3=Hd3),
        out_shape=(
            jax.ShapeDtypeStruct((T, B, He3), jnp.float32),
            jax.ShapeDtypeStruct((T, B, He3), jnp.float32),
            jax.ShapeDtypeStruct((T, B, Hd3), jnp.float32),
        ),
        in_specs=[_vmem()] * 3,
        out_specs=(_vmem(),) * 3,
    )(emb_flat_tm, params["wih_cat"], params["bih_cat"])


# ----------------------------------------------------------------------------
# (2) Fused bidirectional GRU encoder: one kernel, both directions, bf16
#     recurrent weights resident in VMEM, packed-sequence emulated via the
#     length mask.  Writes ONE concatenated [T,B,2He] slab and a concatenated
#     [B,2He] final hidden (no XLA concat/transpose afterwards).
# ----------------------------------------------------------------------------
def _encoder_kernel(gi_f_ref, gi_b_ref, whh_f_ref, bhh_f_ref, whh_b_ref,
                    bhh_b_ref, mask_ref, enc_ref, hcat_ref, *, unroll):
    T, B, _ = gi_f_ref.shape
    He = whh_f_ref.shape[0]
    whh_f = whh_f_ref[...]
    bhh_f = bhh_f_ref[...]
    whh_b = whh_b_ref[...]
    bhh_b = bhh_b_ref[...]

    def step(s, carry):
        h_f, h_b = carry
        tb = T - 1 - s
        m_f = mask_ref[s]                      # [B, 1]
        m_b = mask_ref[tb]
        gh_f = jnp.dot(h_f.astype(jnp.bfloat16), whh_f,
                       preferred_element_type=jnp.float32) + bhh_f
        hn_f = _gru_update(gi_f_ref[s], gh_f, h_f, He)
        h_f = m_f * hn_f + (1.0 - m_f) * h_f   # frozen past length
        gh_b = jnp.dot(h_b.astype(jnp.bfloat16), whh_b,
                       preferred_element_type=jnp.float32) + bhh_b
        hn_b = _gru_update(gi_b_ref[tb], gh_b, h_b, He)
        h_b = m_b * hn_b + (1.0 - m_b) * h_b
        enc_ref[s, :, pl.ds(0, He)] = m_f * h_f      # zeros at pad positions
        enc_ref[tb, :, pl.ds(He, He)] = m_b * h_b
        return h_f, h_b

    h0 = jnp.zeros((B, He), jnp.float32)
    h_f, h_b = lax.fori_loop(0, T, step, (h0, h0), unroll=unroll)
    hcat_ref[:, pl.ds(0, He)] = h_f
    hcat_ref[:, pl.ds(He, He)] = h_b


def pallas_encoder(gi_f, gi_b, p_f, p_b, mask_tb, unroll):
    T, B, _ = gi_f.shape
    He = p_f["whh"].shape[0]
    return pl.pallas_call(
        functools.partial(_encoder_kernel, unroll=unroll),
        out_shape=(
            jax.ShapeDtypeStruct((T, B, 2 * He), jnp.float32),
            jax.ShapeDtypeStruct((B, 2 * He), jnp.float32),
        ),
        in_specs=[_vmem()] * 7,
        out_specs=(_vmem(), _vmem()),
    )(gi_f, gi_b, p_f["whh"], p_f["bhh"], p_b["whh"], p_b["bhh"], mask_tb)


# ----------------------------------------------------------------------------
# (3)+(4) Variational reparameterisation + KL + translator Linear+LeakyReLU in
#         one kernel (all consume encoder_hidden [B,2He]).
# ----------------------------------------------------------------------------
def _var_trans_kernel(h_ref, wmu_ref, bmu_ref, wlv_ref, blv_ref, eps_ref,
                      wtr_ref, btr_ref, z_ref, h0_ref, kl_ref, *, variation):
    h = h_ref[...]
    if variation:
        hb = h.astype(jnp.bfloat16)
        mu = jnp.dot(hb, wmu_ref[...],
                     preferred_element_type=jnp.float32) + bmu_ref[...]
        logvar = jnp.dot(hb, wlv_ref[...],
                         preferred_element_type=jnp.float32) + blv_ref[...]
        std = jnp.exp(0.5 * logvar)
        z = mu + eps_ref[...] * std
        kl_ref[0, 0] = -0.5 * jnp.sum(1.0 + logvar - mu * mu - jnp.exp(logvar))
    else:
        z = h
        kl_ref[0, 0] = jnp.float32(0.0)
    z_ref[...] = z
    y = jnp.dot(z.astype(jnp.bfloat16), wtr_ref[...],
                preferred_element_type=jnp.float32) + btr_ref[...]
    h0_ref[...] = jnp.where(y > 0, y, 0.01 * y)   # nn.LeakyReLU default slope


def pallas_variation_translator(h, params, eps, variation):
    B, D = h.shape
    Hd = params["translator"]["w"].shape[1]
    return pl.pallas_call(
        functools.partial(_var_trans_kernel, variation=variation),
        out_shape=(
            jax.ShapeDtypeStruct((B, D), jnp.float32),
            jax.ShapeDtypeStruct((B, Hd), jnp.float32),
            jax.ShapeDtypeStruct((1, 1), jnp.float32),
        ),
        in_specs=[_vmem()] * 8,
        out_specs=(_vmem(), _vmem(), _smem()),
    )(h, params["mu"]["w"], params["mu"]["b"],
      params["logvar"]["w"], params["logvar"]["b"], eps,
      params["translator"]["w"], params["translator"]["b"])


# ----------------------------------------------------------------------------
# (5)+(6)+(7) Fused attention GRU decoder:
#   prologue : attention projection encp = enc @ W_attn + b (one bf16 matmul)
#   loop     : GRU step + dot-attention on the VPU/XLU (no degenerate M=1/K=T
#              MXU matmuls); h/ctx written into one [T,B,Hd+2He] VMEM slab
#   epilogue : deferred output projection [T*B, Hd+2He] @ [Hd+2He, V] -> logits
# ----------------------------------------------------------------------------
def _decoder_kernel(gi_ref, whh_ref, bhh_ref, h0_ref, enc_ref, wat_ref, bat_ref,
                    wout_ref, bout_ref, nmask_ref, mask_ref, out_ref,
                    encp_sc, hc_sc, *, unroll):
    T, B, _ = gi_ref.shape
    Hd = whh_ref.shape[0]
    E2 = enc_ref.shape[-1]
    V = wout_ref.shape[1]
    whh = whh_ref[...]
    bhh = bhh_ref[...]
    nmask = nmask_ref[...]                 # [T, B] additive: 0 valid / -1e30 pad

    # prologue: folded attention projection of the encoder slab
    encp = (jnp.dot(enc_ref[...].reshape(T * B, E2).astype(jnp.bfloat16),
                    wat_ref[...], preferred_element_type=jnp.float32)
            + bat_ref[...])
    encp_sc[...] = encp.reshape(T, B, Hd)

    def step(t, h):
        m = mask_ref[t]                    # [B, 1]
        gh = jnp.dot(h.astype(jnp.bfloat16), whh,
                     preferred_element_type=jnp.float32) + bhh
        hn = _gru_update(gi_ref[t], gh, h, Hd)
        h = m * hn + (1.0 - m) * h
        # dot-attention: lane reduce for scores, leading-axis reduce for ctx.
        scores = jnp.sum(encp_sc[...] * h[None, :, :], axis=-1) + nmask   # [T,B]
        scores = scores - jnp.max(scores, axis=0, keepdims=True)
        p = jnp.exp(scores)
        # approx=False keeps divide parity with the PyTorch softmax.
        p = p * pl.reciprocal(jnp.sum(p, axis=0, keepdims=True), approx=False)
        ctx = jnp.sum(p[:, :, None] * enc_ref[...], axis=0)              # [B,2He]
        hc_sc[t, :, pl.ds(0, Hd)] = h
        hc_sc[t, :, pl.ds(Hd, E2)] = ctx
        return h

    lax.fori_loop(0, T, step, h0_ref[...], unroll=unroll)

    # epilogue: deferred output projection, one lane-dense matmul
    hc = hc_sc[...].reshape(T * B, Hd + E2)
    logits = (jnp.dot(hc.astype(jnp.bfloat16), wout_ref[...],
                      preferred_element_type=jnp.float32) + bout_ref[...])
    out_ref[...] = logits.reshape(T, B, V)


def pallas_decoder(gi_d, params, h0, enc_tm, nmask_tb, mask_tb, unroll):
    T, B, _ = gi_d.shape
    Hd = params["dec"]["whh"].shape[0]
    E2 = enc_tm.shape[-1]
    V = params["out"]["w"].shape[1]
    return pl.pallas_call(
        functools.partial(_decoder_kernel, unroll=unroll),
        out_shape=jax.ShapeDtypeStruct((T, B, V), jnp.float32),
        in_specs=[_vmem()] * 11,
        out_specs=_vmem(),
        scratch_shapes=[pltpu.VMEM((T, B, Hd), jnp.float32),
                        pltpu.VMEM((T, B, Hd + E2), jnp.float32)],
    )(gi_d, params["dec"]["whh"], params["dec"]["bhh"], h0, enc_tm,
      params["attn"]["w"], params["attn"]["b"],
      params["out"]["w"], params["out"]["b"], nmask_tb, mask_tb)


# ----------------------------------------------------------------------------
# Parameter construction (deterministic, in-script).  Weights / embedding are
# bf16 MXU operands; biases and hidden-state carries stay f32.
# ----------------------------------------------------------------------------
def init_params(key, vocab, embed, enc_hidden, dec_hidden):
    bf16 = jnp.bfloat16

    def nrm(k, shape, scale=0.1, dtype=jnp.float32):
        return (scale * jax.random.normal(k, shape, jnp.float32)).astype(dtype)

    ks = jax.random.split(key, 24)

    def gru(k1, k2, k3, k4, in_dim, hid):
        return {
            "wih": nrm(k1, (in_dim, 3 * hid), dtype=bf16),
            "whh": nrm(k2, (hid, 3 * hid), dtype=bf16),
            "bih": nrm(k3, (1, 3 * hid)),
            "bhh": nrm(k4, (1, 3 * hid)),
        }

    enc_fwd = gru(ks[1], ks[2], ks[3], ks[4], embed, enc_hidden)
    enc_bwd = gru(ks[5], ks[6], ks[7], ks[8], embed, enc_hidden)
    dec = gru(ks[17], ks[18], ks[19], ks[20], embed, dec_hidden)

    return {
        "embedding": nrm(ks[0], (vocab, embed), 1.0, dtype=bf16),
        "enc_fwd": enc_fwd,
        "enc_bwd": enc_bwd,
        "dec": dec,
        # fused input-gate operands: single [E, 3He+3He+3Hd] bf16 matmul
        "wih_cat": jnp.concatenate(
            [enc_fwd["wih"], enc_bwd["wih"], dec["wih"]], axis=1),
        "bih_cat": jnp.concatenate(
            [enc_fwd["bih"], enc_bwd["bih"], dec["bih"]], axis=1),
        "mu": {"w": nrm(ks[9], (2 * enc_hidden, 2 * enc_hidden), dtype=bf16),
               "b": nrm(ks[10], (1, 2 * enc_hidden))},
        "logvar": {"w": nrm(ks[11], (2 * enc_hidden, 2 * enc_hidden), dtype=bf16),
                   "b": nrm(ks[12], (1, 2 * enc_hidden))},
        "translator": {"w": nrm(ks[13], (2 * enc_hidden, dec_hidden), dtype=bf16),
                       "b": nrm(ks[14], (1, dec_hidden))},
        "attn": {"w": nrm(ks[15], (2 * enc_hidden, dec_hidden), dtype=bf16),
                 "b": nrm(ks[16], (1, dec_hidden))},
        "out": {"w": nrm(ks[21], (dec_hidden + 2 * enc_hidden, vocab), dtype=bf16),
                "b": nrm(ks[22], (1, vocab))},
    }


# ----------------------------------------------------------------------------
# Forward pass == VAE.forward(x, lengths, teacher_forcing_ratio, variation)
# ----------------------------------------------------------------------------
def vae_forward(params, x, lengths, eps, teacher_forcing_ratio=1.0, variation=True):
    B, T = x.shape
    He = params["enc_fwd"]["whh"].shape[0]
    Hd = params["dec"]["whh"].shape[0]
    unroll = True if T <= 16 else 2   # cap unroll once T grows (vreg pressure)

    # length masks (packed-sequence emulation), time-major
    mask_bt = (jnp.arange(T)[None, :] < lengths[:, None]).astype(jnp.float32)
    mask_tb = jnp.transpose(mask_bt)[:, :, None]                        # [T, B, 1]
    nmask_tb = jnp.transpose(
        jnp.where(mask_bt > 0, 0.0, -1e30).astype(jnp.float32))         # [T, B]

    # embedding gather (XLA glue) + time-major layout for the recurrent kernels
    emb_tm = jnp.transpose(params["embedding"][x], (1, 0, 2))           # [T,B,E] bf16
    emb_flat = emb_tm.reshape(T * B, -1)

    # (1) one fused input-gate matmul for enc_fwd / enc_bwd / dec
    gi_f, gi_b, gi_d = pallas_input_gates(emb_flat, params, T, B, He, Hd)

    # (2) fused bidirectional GRU encoder -> concatenated [T,B,2He] + [B,2He]
    enc_tm, enc_hidden_raw = pallas_encoder(
        gi_f, gi_b, params["enc_fwd"], params["enc_bwd"], mask_tb, unroll)

    # (3)+(4) variational reparameterisation + KL + translator (one kernel)
    z, dec_h0, kl = pallas_variation_translator(enc_hidden_raw, params, eps, variation)
    kl_loss = kl[0, 0]
    encoder_hidden = z   # == raw hidden when variation=False (pass-through)

    # (5)+(6)+(7) fused attention decoder (attn projection prologue, GRU +
    # attention recurrence, deferred output projection epilogue).
    # TODO(synk): the stochastic per-step teacher-forcing coin flip and the
    # beam-search inference() path are not reproduced (ratio treated as 1.0).
    logits_tm = pallas_decoder(gi_d, params, dec_h0, enc_tm, nmask_tb,
                               mask_tb, unroll)
    out = jnp.transpose(logits_tm, (1, 0, 2))                           # [B, T, V]

    return out, kl_loss, encoder_hidden


# ----------------------------------------------------------------------------
if __name__ == "__main__":
    # 128-aligned model dims keep every kernel output lane-dense; B is a
    # multiple of 8 so [T,B,*] slabs and recurrence dots are sublane-dense.
    VOCAB, EMBED, ENC_H, DEC_H = 256, 128, 128, 128
    B, T = 8, 8

    key = jax.random.PRNGKey(0)
    k_param, k_tok, k_eps = jax.random.split(key, 3)

    params = init_params(k_param, VOCAB, EMBED, ENC_H, DEC_H)
    x = jax.random.randint(k_tok, (B, T), 0, VOCAB, dtype=jnp.int32)
    lengths = jnp.array([T, 5, 7, 3, 8, 6, 4, 8], dtype=jnp.int32)   # all >= 1
    eps = jax.random.normal(k_eps, (B, 2 * ENC_H), jnp.float32)

    out, kl_loss, enc_hidden = vae_forward(
        params, x, lengths, eps, teacher_forcing_ratio=1.0, variation=True
    )
    jax.block_until_ready((out, kl_loss, enc_hidden))

    assert out.shape == (B, T, VOCAB)
    assert enc_hidden.shape == (B, 2 * ENC_H)
    assert kl_loss.shape == ()
    print("KERNEL_OK")
</pallas_src>

<mosaic_0001>
module attributes {stable_mosaic.version = 11 : i64} {
  func.func @_gi_kernel(%arg0: memref<64x128xbf16, #tpu.memory_space<vmem>>, %arg1: memref<128x1152xbf16, #tpu.memory_space<vmem>>, %arg2: memref<1x1152xf32, #tpu.memory_space<vmem>>, %arg3: memref<8x8x384xf32, #tpu.memory_space<vmem>>, %arg4: memref<8x8x384xf32, #tpu.memory_space<vmem>>, %arg5: memref<8x8x384xf32, #tpu.memory_space<vmem>>) attributes {dimension_semantics = [], scalar_prefetch = 0 : i64, scratch_operands = 0 : i64, tpu.core_type = #tpu.core_type<tc>} {
    %c0 = arith.constant 0 : index
    %c0_0 = arith.constant 0 : index
    %0 = vector.load %arg0[%c0, %c0_0] : memref<64x128xbf16, #tpu.memory_space<vmem>>, vector<64x128xbf16>
    %c0_1 = arith.constant 0 : index
    %c0_2 = arith.constant 0 : index
    %1 = vector.load %arg1[%c0_1, %c0_2] : memref<128x1152xbf16, #tpu.memory_space<vmem>>, vector<128x1152xbf16>
    %cst = arith.constant dense<0.000000e+00> : vector<64x1152xf32>
    %2 = tpu.matmul %0, %1, %cst {dimension_numbers = #tpu.dot_dimension_numbers<[1], [0], [0], [1], [0, 0, 1, 1], [], []>} : vector<64x128xbf16>, vector<128x1152xbf16>, vector<64x1152xf32> -> vector<64x1152xf32>
    %c0_3 = arith.constant 0 : index
    %c0_4 = arith.constant 0 : index
    %3 = vector.load %arg2[%c0_3, %c0_4] : memref<1x1152xf32, #tpu.memory_space<vmem>>, vector<1x1152xf32>
    %4 = vector.broadcast %3 : vector<1x1152xf32> to vector<64x1152xf32>
    %5 = arith.addf %2, %4 : vector<64x1152xf32>
    %6 = vector.extract_strided_slice %5 {offsets = [0, 0], sizes = [64, 384], strides = [1, 1]} : vector<64x1152xf32> to vector<64x384xf32>
    %7 = vector.shape_cast %6 : vector<64x384xf32> to vector<8x8x384xf32>
    %c0_5 = arith.constant 0 : index
    %c0_6 = arith.constant 0 : index
    %c0_7 = arith.constant 0 : index
    %8 = vector.load %arg3[%c0_5, %c0_6, %c0_7] : memref<8x8x384xf32, #tpu.memory_space<vmem>>, vector<8x8x384xf32>
    tpu.vector_store %arg3[%c0_5, %c0_6, %c0_7], %7 {strides = array<i32>} : memref<8x8x384xf32, #tpu.memory_space<vmem>>, vector<8x8x384xf32>,
    %9 = vector.extract_strided_slice %5 {offsets = [0, 384], sizes = [64, 384], strides = [1, 1]} : vector<64x1152xf32> to vector<64x384xf32>
    %10 = vector.shape_cast %9 : vector<64x384xf32> to vector<8x8x384xf32>
    %c0_8 = arith.constant 0 : index
    %c0_9 = arith.constant 0 : index
    %c0_10 = arith.constant 0 : index
    %11 = vector.load %arg4[%c0_8, %c0_9, %c0_10] : memref<8x8x384xf32, #tpu.memory_space<vmem>>, vector<8x8x384xf32>
    tpu.vector_store %arg4[%c0_8, %c0_9, %c0_10], %10 {strides = array<i32>} : memref<8x8x384xf32, #tpu.memory_space<vmem>>, vector<8x8x384xf32>,
    %12 = vector.extract_strided_slice %5 {offsets = [0, 768], sizes = [64, 384], strides = [1, 1]} : vector<64x1152xf32> to vector<64x384xf32>
    %13 = vector.shape_cast %12 : vector<64x384xf32> to vector<8x8x384xf32>
    %c0_11 = arith.constant 0 : index
    %c0_12 = arith.constant 0 : index
    %c0_13 = arith.constant 0 : index
    %14 = vector.load %arg5[%c0_11, %c0_12, %c0_13] : memref<8x8x384xf32, #tpu.memory_space<vmem>>, vector<8x8x384xf32>
    tpu.vector_store %arg5[%c0_11, %c0_12, %c0_13], %13 {strides = array<i32>} : memref<8x8x384xf32, #tpu.memory_space<vmem>>, vector<8x8x384xf32>,
    return
  }
}

</mosaic_0001>

<bundles_post_ra>
// kernel: tpu_custom_call.1
= control target key start
LH: loop header
LB: loop body
LE: loop exit
PB: predicated region body
PF: predicated region fallthrough
CT: control target
= control target key end

     0   :  { %11 = vsyncpa [#allocation3], 0  ;;  %s1718_s0 = inlined_call_operand.hbm [shape: bf16[64,128], index: 0, kind: input, shape index: {}]   ;;  %s1719_s1 = inlined_call_operand.hbm [shape: bf16[128,1152], index: 1, kind: input, shape index: {}]   ;;  %s1720_s2 = inlined_call_operand.hbm [shape: f32[1,1152], index: 2, kind: input, shape index: {}]   ;;  %s1721_s3 = inlined_call_operand.hbm [shape: f32[8,8,384], index: 3, kind: output, shape index: {0}]   ;;  %s1722_s4 = inlined_call_operand.hbm [shape: f32[8,8,384], index: 4, kind: output, shape index: {1}]   ;;  %s1723_s5 = inlined_call_operand.hbm [shape: f32[8,8,384], index: 5, kind: output, shape index: {2}]  }
   0x1   :  { %12 = vsyncpa [#allocation6], 0 }
   0x2   :  { %13 = vsyncpa [#allocation4], 0  ;;  %s32_s20 = sshll.u32 %s1719_s1, 4  ;;  %s33_s20 = int_to_ptr.hbm [resolvable:$true] %s32_s20 }
   0x3   :  { %14 = vsyncpa [#allocation10], 0  ;;  %s1515_s21 = smov [#allocation5]   ;;  %s19_s25 = sshll.u32 %s1718_s0, 4  ;;  %s20_s25 = int_to_ptr.hbm [resolvable:$true] %s19_s25 }
   0x4   :  { %s34_s22 = sshll.u32 %s1515_s21, 4  ;;  %s1516_s26 = smov 576   ;;  %s35_s22 = int_to_ptr.vmem [resolvable:$true] %s34_s22 }
   0x5   :  { %s1517_s27 = smov 36   ;;  %s1518_s28 = smov [#allocation2]  }
   0x6   :  { %40 = dma.hbm_to_vmem [thread:$0]  %s33_s20, 9216, %s35_s22, [#allocation6], %s1516_s26, %s1516_s26, %s1517_s27  }
   0x7   :  { %s21_s29 = sshll.u32 %s1518_s28, 4  ;;  %s1519_s30 = smov 64   ;;  %s22_s29 = int_to_ptr.vmem [resolvable:$true] %s21_s29 }
   0x8   :  { %s1520_s6 = smov 4   ;;  %s46_s8 = sshll.u32 %s1720_s2, 4  ;;  %s47_s8 = int_to_ptr.hbm [resolvable:$true] %s46_s8 }
   0x9   :  { %27 = dma.hbm_to_vmem [thread:$0]  %s20_s25, 512, %s22_s29, [#allocation3], %s1519_s30, %s1519_s30, %s1520_s6  }
   0xa   :  { %s1521_s9 = smov [#allocation7]  }
   0xb   :  { %s48_s10 = sshll.u32 %s1521_s9, 4  ;;  %s49_s10 = int_to_ptr.vmem [resolvable:$true] %s48_s10 }
   0xc   :  { %51 = dma.hbm_to_vmem [thread:$0]  %s47_s8, 144, %s49_s10, [#allocation6]  }
   0xd   :  { %1507 = dma.done.wait [#allocation3], 512  }
   0xe   :  { %1508 = vsyncadd [#allocation3], 4294966784 }
   0xf   :  { %1509 = dma.done.wait [#allocation6], 9360  }
  0x10   :  { %1510 = vsyncadd [#allocation6], 4294957936  ;;  %v1224_v0 = vld [vmem:[#allocation5 + $0x1f8] sm:$0xf]  ;;  %v1329_v1 = vld [vmem:[#allocation5 + $0x218] sm:$0xf0] }
  0x11   :  { %v1232_v2 = vld [vmem:[#allocation5 + $0x200] sm:$0xf]  ;;  %v1225_v3 = vor.u32 %v1329_v1, %v1224_v0  ;;  %v1330_v4 = vld [vmem:[#allocation5 + $0x220] sm:$0xf0]  ;;  %v1188_v5 = vld [vmem:[#allocation5 + $0x1b0] sm:$0xf] }
  0x12   :  { %v1320_v6 = vld [vmem:[#allocation5 + $0x1d0] sm:$0xf0]  ;;  %v1233_v7 = vor.u32 %v1330_v4, %v1232_v2  ;;  %v1196_v8 = vld [vmem:[#allocation5 + $0x1b8] sm:$0xf]  ;;  %v1321_v9 = vld [vmem:[#allocation5 + $0x1d8] sm:$0xf0] }
  0x13   :  { %1334 = vmatpush.bf16.msra.mxu1 %v1225_v3  ;;  %v1189_v10 = vor.u32 %v1320_v6, %v1188_v5  ;;  %566 = vmatpush.bf16.msra.mxu0 %v1225_v3  ;;  %v1197_v11 = vor.u32 %v1321_v9, %v1196_v8  ;;  %v1152_v12 = vld [vmem:[#allocation5 + $0x168] sm:$0xf]  ;;  %v1311_v13 = vld [vmem:[#allocation5 + $0x188] sm:$0xf0]  ;;  %v1160_v14 = vld [vmem:[#allocation5 + $0x170] sm:$0xf] }
  0x14   :  { %624 = vmatpush.bf16.msra.mxu2 %v1233_v7  ;;  %v1312_v15 = vld [vmem:[#allocation5 + $0x190] sm:$0xf0]  ;;  %v1326_v16 = vld [vmem:[#allocation5 + $0x204] sm:$0xf]  ;;  %v1153_v17 = vor.u32 %v1311_v13, %v1152_v12  ;;  %v1234_v18 = vld [vmem:[#allocation5 + $0x224] sm:$0xf0] }
  0x15   :  { %v1161_v19 = vor.u32 %v1312_v15, %v1160_v14  ;;  %v1116_v20 = vld [vmem:[#allocation5 + $0x120] sm:$0xf]  ;;  %v1302_v21 = vld [vmem:[#allocation5 + $0x140] sm:$0xf0]  ;;  %v1237_v22 = vor.u32 %v1326_v16, %v1234_v18  ;;  %v1317_v23 = vld [vmem:[#allocation5 + $0x1bc] sm:$0xf] }
  0x16   :  { %v1124_v24 = vld [vmem:[#allocation5 + $0x128] sm:$0xf]  ;;  %v1303_v25 = vld [vmem:[#allocation5 + $0x148] sm:$0xf0]  ;;  %v1198_v26 = vld [vmem:[#allocation5 + $0x1dc] sm:$0xf0]  ;;  %v1117_v28 = vor.u32 %v1302_v21, %v1116_v20 }
  0x17   :  { %1335 = vmatpush.bf16.msra.mxu1 %v1189_v10  ;;  %567 = vmatpush.bf16.msra.mxu0 %v1189_v10  ;;  %v1201_v27 = vor.u32 %v1317_v23, %v1198_v26  ;;  %v1308_v29 = vld [vmem:[#allocation5 + $0x174] sm:$0xf]  ;;  %v1162_v30 = vld [vmem:[#allocation5 + $0x194] sm:$0xf0]  ;;  %v1125_v31 = vor.u32 %v1303_v25, %v1124_v24  ;;  %v1293_v33 = vld [vmem:[#allocation5 + $0xf8] sm:$0xf0] }
  0x18   :  { %625 = vmatpush.bf16.msra.mxu2 %v1197_v11  ;;  %653 = vmatpush.bf16.msra.mxu3 %v1237_v22  ;;  %v1080_v32 = vld [vmem:[#allocation5 + $0xd8] sm:$0xf]  ;;  %v1088_v34 = vld [vmem:[#allocation5 + $0xe0] sm:$0xf]  ;;  %v1294_v35 = vld [vmem:[#allocation5 + $0x100] sm:$0xf0]  ;;  %v1165_v36 = vor.u32 %v1308_v29, %v1162_v30 }
  0x19   :  { %v1081_v37 = vor.u32 %v1293_v33, %v1080_v32  ;;  %v1299_v38 = vld [vmem:[#allocation5 + $0x12c] sm:$0xf]  ;;  %v1126_v39 = vld [vmem:[#allocation5 + $0x14c] sm:$0xf0]  ;;  %v1089_v40 = vor.u32 %v1294_v35, %v1088_v34  ;;  %v1284_v42 = vld [vmem:[#allocation5 + $0xb0] sm:$0xf0] }
  0x1a   :  { %v1044_v41 = vld [vmem:[#allocation5 + $0x90] sm:$0xf]  ;;  %v1052_v43 = vld [vmem:[#allocation5 + $0x98] sm:$0xf]  ;;  %v1285_v44 = vld [vmem:[#allocation5 + $0xb8] sm:$0xf0]  ;;  %v1129_v45 = vor.u32 %v1299_v38, %v1126_v39 }
  0x1b   :  { %1336 = vmatpush.bf16.msra.mxu1 %v1153_v17  ;;  %568 = vmatpush.bf16.msra.mxu0 %v1153_v17  ;;  %v1045_v46 = vor.u32 %v1284_v42, %v1044_v41  ;;  %v1290_v47 = vld [vmem:[#allocation5 + $0xe4] sm:$0xf]  ;;  %v1090_v48 = vld [vmem:[#allocation5 + $0x104] sm:$0xf0]  ;;  %v1053_v49 = vor.u32 %v1285_v44, %v1052_v43  ;;  %v1275_v51 = vld [vmem:[#allocation5 + $0x68] sm:$0xf0] }
  0x1c   :  { %626 = vmatpush.bf16.msra.mxu2 %v1161_v19  ;;  %654 = vmatpush.bf16.msra.mxu3 %v1201_v27  ;;  %v1008_v50 = vld [vmem:[#allocation5 + $0x48] sm:$0xf]  ;;  %v1016_v52 = vld [vmem:[#allocation5 + $0x50] sm:$0xf]  ;;  %v1276_v53 = vld [vmem:[#allocation5 + $0x70] sm:$0xf0]  ;;  %v1093_v54 = vor.u32 %v1290_v47, %v1090_v48 }
  0x1d   :  { %v1009_v55 = vor.u32 %v1275_v51, %v1008_v50  ;;  %v972_v56 = vld [vmem:[#allocation5] sm:$0xf]  ;;  %v1281_v57 = vld [vmem:[#allocation5 + $0x9c] sm:$0xf]  ;;  %v1017_v59 = vor.u32 %v1276_v53, %v1016_v52  ;;  %v1266_v60 = vld [vmem:[#allocation5 + $0x20] sm:$0xf0] }
  0x1e   :  { %v1054_v58 = vld [vmem:[#allocation5 + $0xbc] sm:$0xf0]  ;;  %v1325_v61 = vld [vmem:[#allocation5 + $0x1fc] sm:$0xf]  ;;  %v980_v63 = vld [vmem:[#allocation5 + $0x8] sm:$0xf]  ;;  %v973_v6 = vor.u32 %v1266_v60, %v972_v56 }
  0x1f   :  { %1337 = vmatpush.bf16.msra.mxu1 %v1117_v28  ;;  %569 = vmatpush.bf16.msra.mxu0 %v1117_v28  ;;  %v1226_v62 = vld [vmem:[#allocation5 + $0x21c] sm:$0xf0]  ;;  %v1267_v0 = vld [vmem:[#allocation5 + $0x28] sm:$0xf0]  ;;  %v1240_v1 = vld [vmem:[#allocation5 + $0x208] sm:$0xf]  ;;  %v1057_v2 = vor.u32 %v1281_v57, %v1054_v58 }
  0x20   :  { %627 = vmatpush.bf16.msra.mxu2 %v1125_v31  ;;  %655 = vmatpush.bf16.msra.mxu3 %v1165_v36  ;;  %v1331_v3 = vld [vmem:[#allocation5 + $0x228] sm:$0xf0]  ;;  %v1248_v4 = vld [vmem:[#allocation5 + $0x210] sm:$0xf]  ;;  %v1332_v5 = vld [vmem:[#allocation5 + $0x230] sm:$0xf0]  ;;  %v1229_v8 = vor.u32 %v1325_v61, %v1226_v62  ;;  %v981_v9 = vor.u32 %v1267_v0, %v980_v63 }
  0x21   :  { %v1566_v7 = vld [vmem:[#allocation2 + $0x10] sm:$0xff]  ;;  %v1018_v12 = vld [vmem:[#allocation5 + $0x74] sm:$0xf0]  ;;  %v1241_v14 = vor.u32 %v1331_v3, %v1240_v1  ;;  %v1249_v15 = vor.u32 %v1332_v5, %v1248_v4  ;;  %v1204_v16 = vld [vmem:[#allocation5 + $0x1c0] sm:$0xf]  ;;  %s1522_s0 = smov [#allocation8]  }
  0x22   :  { %v1316_v10 = vld [vmem:[#allocation5 + $0x1b4] sm:$0xf]  ;;  %v1190_v13 = vld [vmem:[#allocation5 + $0x1d4] sm:$0xf0]  ;;  %v1322_v17 = vld [vmem:[#allocation5 + $0x1e0] sm:$0xf0] }
  0x23   :  { %1338 = vmatpush.bf16.msra.mxu1 %v1081_v37  ;;  %570 = vmatpush.bf16.msra.mxu0 %v1081_v37  ;;  %v1272_v11 = vld [vmem:[#allocation5 + $0x54] sm:$0xf]  ;;  %v1212_v18 = vld [vmem:[#allocation5 + $0x1c8] sm:$0xf]  ;;  %v1323_v19 = vld [vmem:[#allocation5 + $0x1e8] sm:$0xf0]  ;;  %v1193_v23 = vor.u32 %v1316_v10, %v1190_v13  ;;  %v1205_v27 = vor.u32 %v1322_v17, %v1204_v16 }
  0x24   :  { %628 = vmatpush.bf16.msra.mxu2 %v1089_v40  ;;  %656 = vmatpush.bf16.msra.mxu3 %v1129_v45  ;;  %v1568_v20 = vld [vmem:[#allocation2] sm:$0xff]  ;;  %v1307_v21 = vld [vmem:[#allocation5 + $0x16c] sm:$0xf]  ;;  %v1021_v22 = vor.u32 %v1272_v11, %v1018_v12  ;;  %v1154_v24 = vld [vmem:[#allocation5 + $0x18c] sm:$0xf0]  ;;  %v1213_v29 = vor.u32 %v1323_v19, %v1212_v18  ;;  %s903_s2 = sshll.u32 %s1522_s0, 4  ;;  %s904_s2 = int_to_ptr.vmem [resolvable:$true] %s903_s2 }
  0x25   :  { %v1263_v25 = vld [vmem:[#allocation5 + $0xc] sm:$0xf]  ;;  %v982_v26 = vld [vmem:[#allocation5 + $0x2c] sm:$0xf0]  ;;  %v1168_v28 = vld [vmem:[#allocation5 + $0x178] sm:$0xf]  ;;  %v1157_v36 = vor.u32 %v1307_v21, %v1154_v24 }
  0x26   :  { %v1328_v30 = vld [vmem:[#allocation5 + $0x214] sm:$0xf]  ;;  %v1250_v31 = vld [vmem:[#allocation5 + $0x234] sm:$0xf0]  ;;  %v1313_v32 = vld [vmem:[#allocation5 + $0x198] sm:$0xf0]  ;;  %v985_v35 = vor.u32 %v1263_v25, %v982_v26 }
  0x27   :  { %1339 = vmatpush.bf16.msra.mxu1 %v1045_v46  ;;  %571 = vmatpush.bf16.msra.mxu0 %v1045_v46  ;;  %v1176_v33 = vld [vmem:[#allocation5 + $0x180] sm:$0xf]  ;;  %v1314_v34 = vld [vmem:[#allocation5 + $0x1a0] sm:$0xf0]  ;;  %v1118_v38 = vld [vmem:[#allocation5 + $0x144] sm:$0xf0]  ;;  %v1253_v39 = vor.u32 %v1328_v30, %v1250_v31  ;;  %v1169_v40 = vor.u32 %v1313_v32, %v1168_v28 }
  0x28   :  { %629 = vmatpush.bf16.msra.mxu2 %v1053_v49  ;;  %657 = vmatpush.bf16.msra.mxu3 %v1093_v54  ;;  %v1298_v37 = vld [vmem:[#allocation5 + $0x124] sm:$0xf]  ;;  %v1132_v41 = vld [vmem:[#allocation5 + $0x130] sm:$0xf]  ;;  %v1177_v42 = vor.u32 %v1314_v34, %v1176_v33  ;;  %v1319_v43 = vld [vmem:[#allocation5 + $0x1cc] sm:$0xf] }
  0x29   :  { %v1214_v44 = vld [vmem:[#allocation5 + $0x1ec] sm:$0xf0]  ;;  %v1304_v45 = vld [vmem:[#allocation5 + $0x150] sm:$0xf0]  ;;  %v1140_v46 = vld [vmem:[#allocation5 + $0x138] sm:$0xf]  ;;  %v1121_v48 = vor.u32 %v1298_v37, %v1118_v38 }
  0x2a   :  { %v1305_v47 = vld [vmem:[#allocation5 + $0x158] sm:$0xf0]  ;;  %v1082_v50 = vld [vmem:[#allocation5 + $0xfc] sm:$0xf0]  ;;  %v1217_v51 = vor.u32 %v1319_v43, %v1214_v44  ;;  %v1133_v52 = vor.u32 %v1304_v45, %v1132_v41  ;;  %v1096_v53 = vld [vmem:[#allocation5 + $0xe8] sm:$0xf] }
  0x2b   :  { %1340 = vmatpush.bf16.msra.mxu1 %v1009_v55  ;;  %572 = vmatpush.bf16.msra.mxu0 %v1009_v55  ;;  %v1289_v49 = vld [vmem:[#allocation5 + $0xdc] sm:$0xf]  ;;  %v1141_v54 = vor.u32 %v1305_v47, %v1140_v46  ;;  %v1310_v55 = vld [vmem:[#allocation5 + $0x184] sm:$0xf]  ;;  %v1178_v56 = vld [vmem:[#allocation5 + $0x1a4] sm:$0xf0] }
  0x2c   :  { %630 = vmatpush.bf16.msra.mxu2 %v1017_v59  ;;  %658 = vmatpush.bf16.msra.mxu3 %v1057_v2  ;;  %v1295_v57 = vld [vmem:[#allocation5 + $0x108] sm:$0xf0]  ;;  %v1104_v58 = vld [vmem:[#allocation5 + $0xf0] sm:$0xf]  ;;  %v1296_v59 = vld [vmem:[#allocation5 + $0x110] sm:$0xf0]  ;;  %v1085_v60 = vor.u32 %v1289_v49, %v1082_v50  ;;  %v1181_v61 = vor.u32 %v1310_v55, %v1178_v56 }
  0x2d   :  { %v1280_v62 = vld [vmem:[#allocation5 + $0x94] sm:$0xf]  ;;  %v1046_v63 = vld [vmem:[#allocation5 + $0xb4] sm:$0xf0]  ;;  %v1097_v0 = vor.u32 %v1295_v57, %v1096_v53  ;;  %v1105_v1 = vor.u32 %v1296_v59, %v1104_v58  ;;  %v1060_v3 = vld [vmem:[#allocation5 + $0xa0] sm:$0xf] }
  0x2e   :  { %v1574_v2 = vld [vmem:[#allocation2 + $0x18] sm:$0xff]  ;;  %v1286_v4 = vld [vmem:[#allocation5 + $0xc0] sm:$0xf0]  ;;  %v1576_v5 = vld [vmem:[#allocation2 + $0x8] sm:$0xff]  ;;  %s905_s13 = sshll.u32 %s1721_s3, 4  ;;  %s1523_s14 = smov 384   ;;  %s906_s13 = int_to_ptr.hbm [resolvable:$true] %s905_s13 }
  0x2f   :  { %1341 = vmatpush.bf16.msra.mxu1 %v973_v6  ;;  %573 = vmatpush.bf16.msra.mxu0 %v973_v6  ;;  %v1049_v6 = vor.u32 %v1280_v62, %v1046_v63  ;;  %v1061_v10 = vor.u32 %v1286_v4, %v1060_v3  ;;  %v1024_v11 = vld [vmem:[#allocation5 + $0x58] sm:$0xf]  ;;  %v1277_v12 = vld [vmem:[#allocation5 + $0x78] sm:$0xf0]  ;;  %v1262_v13 = vld [vmem:[#allocation5 + $0x4] sm:$0xf] }
  0x30   :  { %631 = vmatpush.bf16.msra.mxu2 %v981_v9  ;;  %659 = vmatpush.bf16.msra.mxu3 %v1021_v22  ;;  %v1010_v9 = vld [vmem:[#allocation5 + $0x6c] sm:$0xf0]  ;;  %v1287_v16 = vld [vmem:[#allocation5 + $0xc8] sm:$0xf0]  ;;  %v1301_v21 = vld [vmem:[#allocation5 + $0x13c] sm:$0xf]  ;;  %v1025_v24 = vor.u32 %v1277_v12, %v1024_v11 }
  0x31   :  { %v1327_v18 = vld [vmem:[#allocation5 + $0x20c] sm:$0xf]  ;;  %v1142_v22 = vld [vmem:[#allocation5 + $0x15c] sm:$0xf0]  ;;  %v988_v25 = vld [vmem:[#allocation5 + $0x10] sm:$0xf] }
  0x32   :  { %584 = vmatmul.bf16.vlgmr.msra.gmra.mxu1 %v1566_v7  ;;  %574 = vmatmul.bf16.vlgmr.msra.gmra.mxu0 %v1568_v20  ;;  %v1268_v26 = vld [vmem:[#allocation5 + $0x30] sm:$0xf0]  ;;  %v1032_v28 = vld [vmem:[#allocation5 + $0x60] sm:$0xf]  ;;  %v1256_v31 = vld [vmem:[#allocation5 + $0x218] sm:$0xf] }
  0x33   :  { %595 = vmatpush.bf16.msrb.mxu1 %v1229_v8  ;;  %682 = vmatpush.bf16.msrb.mxu0 %v1241_v14  ;;  %v1271_v8 = vld [vmem:[#allocation5 + $0x4c] sm:$0xf]  ;;  %v974_v14 = vld [vmem:[#allocation5 + $0x24] sm:$0xf0]  ;;  %v1292_v30 = vld [vmem:[#allocation5 + $0xf4] sm:$0xf]  ;;  %v989_v38 = vor.u32 %v1268_v26, %v988_v25 }
  0x34   :  { %740 = vmatpush.bf16.msrb.mxu2 %v1249_v15  ;;  %660 = vmatpush.bf16.msra.mxu3 %v985_v35  ;;  %v1068_v15 = vld [vmem:[#allocation5 + $0xa8] sm:$0xf]  ;;  %v1013_v17 = vor.u32 %v1271_v8, %v1010_v9  ;;  %v1333_v32 = vld [vmem:[#allocation5 + $0x238] sm:$0xf0]  ;;  %v1106_v34 = vld [vmem:[#allocation5 + $0x114] sm:$0xf0]  ;;  %v977_v35 = vor.u32 %v1262_v13, %v974_v14 }
  0x35   :  { %632 = vmatmul.bf16.vlgmr.msra.gmra.mxu2 %v1568_v20  ;;  %v1069_v19 = vor.u32 %v1287_v16, %v1068_v15  ;;  %v1257_v41 = vor.u32 %v1333_v32, %v1256_v31  ;;  %v1324_v43 = vld [vmem:[#allocation5 + $0x1f0] sm:$0xf0]  ;;  %v1309_v45 = vld [vmem:[#allocation5 + $0x17c] sm:$0xf]  ;;  %v1170_v46 = vld [vmem:[#allocation5 + $0x19c] sm:$0xf0] }
  0x36   :  { %v1269_v49 = vld [vmem:[#allocation5 + $0x38] sm:$0xf0]  ;;  %v1134_v53 = vld [vmem:[#allocation5 + $0x154] sm:$0xf0]  ;;  %v1315_v55 = vld [vmem:[#allocation5 + $0x1a8] sm:$0xf0] }
  0x37   :  { %596 = vmatpush.bf16.msrb.mxu1 %v1193_v23  ;;  %683 = vmatpush.bf16.msrb.mxu0 %v1205_v27  ;;  %v1242_v23 = vld [vmem:[#allocation5 + $0x22c] sm:$0xf0]  ;;  %v1145_v27 = vor.u32 %v1301_v21, %v1142_v22  ;;  %v1283_v56 = vld [vmem:[#allocation5 + $0xac] sm:$0xf]  ;;  %v1306_v62 = vld [vmem:[#allocation5 + $0x160] sm:$0xf0] }
  0x38   :  { %741 = vmatpush.bf16.msrb.mxu2 %v1213_v29  ;;  %769 = vmatpush.bf16.msrb.mxu3 %v1253_v39  ;;  %v1278_v29 = vld [vmem:[#allocation5 + $0x80] sm:$0xf0]  ;;  %v1245_v37 = vor.u32 %v1327_v18, %v1242_v23  ;;  %v1070_v57 = vld [vmem:[#allocation5 + $0xcc] sm:$0xf0]  ;;  %v1265_v12 = vld [vmem:[#allocation5 + $0x1c] sm:$0xf] }
  0x39   :  { %661 = vmatmul.bf16.vlgmr.msra.gmra.mxu3 %v1568_v20  ;;  %v1033_v33 = vor.u32 %v1278_v29, %v1032_v28  ;;  %v1318_v39 = vld [vmem:[#allocation5 + $0x1c4] sm:$0xf]  ;;  %v1073_v59 = vor.u32 %v1283_v56, %v1070_v57  ;;  %v1098_v3 = vld [vmem:[#allocation5 + $0x10c] sm:$0xf0]  ;;  %v998_v13 = vld [vmem:[#allocation5 + $0x3c] sm:$0xf0] }
  0x3a   :  { %v1274_v63 = vld [vmem:[#allocation5 + $0x64] sm:$0xf]  ;;  %v1001_v14 = vor.u32 %v1265_v12, %v998_v13  ;;  %v1273_v15 = vld [vmem:[#allocation5 + $0x5c] sm:$0xf]  ;;  %v1026_v16 = vld [vmem:[#allocation5 + $0x7c] sm:$0xf0] }
  0x3b   :  { %597 = vmatpush.bf16.msrb.mxu1 %v1157_v36  ;;  %684 = vmatpush.bf16.msrb.mxu0 %v1169_v40  ;;  %v1109_v36 = vor.u32 %v1292_v30, %v1106_v34  ;;  %v1206_v40 = vld [vmem:[#allocation5 + $0x1e4] sm:$0xf0]  ;;  %v1282_v9 = vld [vmem:[#allocation5 + $0xa4] sm:$0xf]  ;;  %v1029_v18 = vor.u32 %v1273_v15, %v1026_v16  ;;  %v1264_v21 = vld [vmem:[#allocation5 + $0x14] sm:$0xf] }
  0x3c   :  { %742 = vmatpush.bf16.msrb.mxu2 %v1177_v42  ;;  %770 = vmatpush.bf16.msrb.mxu3 %v1217_v51  ;;  %v1220_v42 = vld [vmem:[#allocation5 + $0x1d0] sm:$0xf]  ;;  %v1209_v44 = vor.u32 %v1318_v39, %v1206_v40  ;;  %v1173_v51 = vor.u32 %v1309_v45, %v1170_v46  ;;  %v990_v22 = vld [vmem:[#allocation5 + $0x34] sm:$0xf0]  ;;  %v1288_v25 = vld [vmem:[#allocation5 + $0xd0] sm:$0xf0] }
  0x3d   :  { %v1221_v47 = vor.u32 %v1324_v43, %v1220_v42  ;;  %v993_v26 = vor.u32 %v1264_v21, %v990_v22  ;;  %v1040_v28 = vld [vmem:[#allocation5 + $0x68] sm:$0xf]  ;;  %v1279_v29 = vld [vmem:[#allocation5 + $0x88] sm:$0xf0]  ;;  %v1004_v31 = vld [vmem:[#allocation5 + $0x20] sm:$0xf] }
  0x3e   :  { %v1041_v30 = vor.u32 %v1279_v29, %v1040_v28  ;;  %v1270_v32 = vld [vmem:[#allocation5 + $0x40] sm:$0xf0]  ;;  %s1524_s15 = smov 24   ;;  %s1525_s3 = smov [#allocation9]  }
  0x3f   :  { %598 = vmatpush.bf16.msrb.mxu1 %v1121_v48  ;;  %685 = vmatpush.bf16.msrb.mxu0 %v1133_v52  ;;  %v996_v48 = vld [vmem:[#allocation5 + $0x18] sm:$0xf]  ;;  %v1300_v52 = vld [vmem:[#allocation5 + $0x134] sm:$0xf]  ;;  %v1605_v34 = vld [vmem:[#allocation7] sm:$0xff]  ;;  %s916_s16 = sshll.u32 %s1525_s3, 4  ;;  %s917_s16 = int_to_ptr.vmem [resolvable:$true] %s916_s16 }
  0x40   :  { %743 = vmatpush.bf16.msrb.mxu2 %v1141_v54  ;;  %771 = vmatpush.bf16.msrb.mxu3 %v1181_v61  ;;  %v997_v50 = vor.u32 %v1269_v49, %v996_v48  ;;  %v1184_v54 = vld [vmem:[#allocation5 + $0x188] sm:$0xf]  ;;  %v1137_v61 = vor.u32 %v1300_v52, %v1134_v53  ;;  %v1617_v45 = vperm.slane %v1605_v34, 3  ;;  %s918_s19 = sshll.u32 %s1722_s4, 4  ;;  %s1526_s20 = smov [#allocation11]   ;;  %s919_s19 = int_to_ptr.hbm [resolvable:$true] %s918_s19 }
  0x41   :  { %v1185_v58 = vor.u32 %v1315_v55, %v1184_v54  ;;  %s929_s21 = sshll.u32 %s1526_s20, 4  ;;  %s931_s24 = sshll.u32 %s1723_s5, 4  ;;  %s930_s21 = int_to_ptr.vmem [resolvable:$true] %s929_s21  ;;  %s932_s24 = int_to_ptr.hbm [resolvable:$true] %s931_s24 }
  0x42   :  { %589 = vmatmul.bf16.gmra.mxu1 %v1574_v2  ;;  %579 = vmatmul.bf16.gmra.mxu0 %v1576_v5 }
  0x43   :  { %599 = vmatpush.bf16.msrb.mxu1 %v1085_v60  ;;  %686 = vmatpush.bf16.msrb.mxu0 %v1097_v0  ;;  %v1148_v60 = vld [vmem:[#allocation5 + $0x140] sm:$0xf]  ;;  %v1034_v0 = vld [vmem:[#allocation5 + $0x84] sm:$0xf0] }
  0x44   :  { %744 = vmatpush.bf16.msrb.mxu2 %v1105_v1  ;;  %772 = vmatpush.bf16.msrb.mxu3 %v1145_v27  ;;  %v1291_v1 = vld [vmem:[#allocation5 + $0xec] sm:$0xf]  ;;  %v1149_v4 = vor.u32 %v1306_v62, %v1148_v60 }
  0x45   :  { %637 = vmatmul.bf16.gmra.mxu2 %v1576_v5  ;;  %v1101_v8 = vor.u32 %v1291_v1, %v1098_v3 }
  0x47   :  { %600 = vmatpush.bf16.msrb.mxu1 %v1049_v6  ;;  %687 = vmatpush.bf16.msrb.mxu0 %v1061_v10  ;;  %v1037_v6 = vor.u32 %v1274_v63, %v1034_v0  ;;  %v1062_v10 = vld [vmem:[#allocation5 + $0xc4] sm:$0xf0] }
  0x48   :  { %745 = vmatpush.bf16.msrb.mxu2 %v1069_v19  ;;  %773 = vmatpush.bf16.msrb.mxu3 %v1109_v36  ;;  %v1065_v11 = vor.u32 %v1282_v9, %v1062_v10  ;;  %v1297_v19 = vld [vmem:[#allocation5 + $0x118] sm:$0xf0] }
  0x49   :  { %666 = vmatmul.bf16.gmra.mxu3 %v1576_v5 }
  0x4b   :  { %601 = vmatpush.bf16.msrb.mxu1 %v1013_v17  ;;  %688 = vmatpush.bf16.msrb.mxu0 %v1025_v24  ;;  %v1112_v17 = vld [vmem:[#allocation5 + $0xf8] sm:$0xf]  ;;  %v1076_v24 = vld [vmem:[#allocation5 + $0xb0] sm:$0xf] }
  0x4c   :  { %746 = vmatpush.bf16.msrb.mxu2 %v1033_v33  ;;  %774 = vmatpush.bf16.msrb.mxu3 %v1073_v59  ;;  %v1113_v23 = vor.u32 %v1297_v19, %v1112_v17  ;;  %v1077_v27 = vor.u32 %v1288_v25, %v1076_v24  ;;  %v1005_v33 = vor.u32 %v1270_v32, %v1004_v31 }
  0x4f   :  { %602 = vmatpush.bf16.msrb.mxu1 %v977_v35  ;;  %689 = vmatpush.bf16.msrb.mxu0 %v989_v38  ;;  %v156_v35 = vperm.slane %v1605_v34, 0 }
  0x50   :  { %747 = vmatpush.bf16.msrb.mxu2 %v997_v50  ;;  %775 = vmatpush.bf16.msrb.mxu3 %v1037_v6 }
  0x52   :  { %603 = vmatmul.bf16.vlgmr.msrb.gmra.mxu1 %v1568_v20  ;;  %690 = vmatmul.bf16.vlgmr.msrb.gmra.mxu0 %v1568_v20 }
  0x53   :  { %711 = vmatpush.bf16.msra.mxu1 %v1245_v37  ;;  %798 = vmatpush.bf16.msra.mxu0 %v1257_v41 }
  0x54   :  { %1342 = vmatpush.bf16.msra.mxu2 %v1257_v41  ;;  %776 = vmatpush.bf16.msrb.mxu3 %v1001_v14 }
  0x55   :  { %642 = vmatmul.bf16.gmra.mxu2 %v1566_v7 }
  0x57   :  { %712 = vmatpush.bf16.msra.mxu1 %v1209_v44  ;;  %799 = vmatpush.bf16.msra.mxu0 %v1221_v47 }
  0x58   :  { %1343 = vmatpush.bf16.msra.mxu2 %v1221_v47 }
  0x59   :  { %671 = vmatmul.bf16.gmra.mxu3 %v1566_v7 }
  0x5b   :  { %713 = vmatpush.bf16.msra.mxu1 %v1173_v51  ;;  %800 = vmatpush.bf16.msra.mxu0 %v1185_v58 }
  0x5c   :  { %1344 = vmatpush.bf16.msra.mxu2 %v1185_v58 }
  0x5f   :  { %714 = vmatpush.bf16.msra.mxu1 %v1137_v61  ;;  %801 = vmatpush.bf16.msra.mxu0 %v1149_v4  ;;  %v1625_v61 = vperm.slane %v1605_v34, 1 }
  0x60   :  { %1345 = vmatpush.bf16.msra.mxu2 %v1149_v4 }
  0x62   :  { %608 = vmatmul.bf16.gmra.mxu1 %v1576_v5  ;;  %695 = vmatmul.bf16.gmra.mxu0 %v1576_v5 }
  0x63   :  { %715 = vmatpush.bf16.msra.mxu1 %v1101_v8  ;;  %802 = vmatpush.bf16.msra.mxu0 %v1113_v23 }
  0x64   :  { %1346 = vmatpush.bf16.msra.mxu2 %v1113_v23 }
  0x65   :  { %647 = vmatmul.bf16.gmra.mxu2 %v1574_v2 }
  0x67   :  { %716 = vmatpush.bf16.msra.mxu1 %v1065_v11  ;;  %803 = vmatpush.bf16.msra.mxu0 %v1077_v27 }
  0x68   :  { %1347 = vmatpush.bf16.msra.mxu2 %v1077_v27 }
  0x69   :  { %676 = vmatmul.bf16.gmra.mxu3 %v1574_v2 }
  0x6b   :  { %717 = vmatpush.bf16.msra.mxu1 %v1029_v18  ;;  %804 = vmatpush.bf16.msra.mxu0 %v1041_v30 }
  0x6c   :  { %1348 = vmatpush.bf16.msra.mxu2 %v1041_v30 }
  0x6f   :  { %718 = vmatpush.bf16.msra.mxu1 %v993_v26  ;;  %805 = vmatpush.bf16.msra.mxu0 %v1005_v33 }
  0x70   :  { %1349 = vmatpush.bf16.msra.mxu2 %v1005_v33 }
  0x72   :  { %613 = vmatmul.bf16.gmra.mxu1 %v1566_v7  ;;  %700 = vmatmul.bf16.gmra.mxu0 %v1566_v7 }
  0x75   :  { %748 = vmatmul.bf16.vlgmr.msrb.gmra.mxu2 %v1568_v20 }
  0x79   :  { %777 = vmatmul.bf16.vlgmr.msrb.gmra.mxu3 %v1568_v20 }
  0x82   :  { %618 = vmatmul.bf16.gmra.mxu1 %v1574_v2  ;;  %705 = vmatmul.bf16.gmra.mxu0 %v1574_v2 }
  0x85   :  { %753 = vmatmul.bf16.gmra.mxu2 %v1576_v5 }
  0x89   :  { %782 = vmatmul.bf16.gmra.mxu3 %v1576_v5 }
  0x92   :  { %719 = vmatmul.bf16.vlgmr.msra.gmra.mxu1 %v1568_v20  ;;  %806 = vmatmul.bf16.vlgmr.msra.gmra.mxu0 %v1568_v20 }
  0x95   :  { %758 = vmatmul.bf16.gmra.mxu2 %v1566_v7 }
  0x99   :  { %787 = vmatmul.bf16.gmra.mxu3 %v1566_v7 }
  0xa2   :  { %724 = vmatmul.bf16.gmra.mxu1 %v1576_v5  ;;  %811 = vmatmul.bf16.gmra.mxu0 %v1576_v5  ;;  %v1613_v5 = vperm.slane %v1605_v34, 2 }
  0xa5   :  { %763 = vmatmul.bf16.gmra.mxu2 %v1574_v2 }
  0xa9   :  { %792 = vmatmul.bf16.gmra.mxu3 %v1574_v2 }
  0xaf   :  { %v585_v36 = vpop.f32.mrf.mxu1  ;;  %v575_v37 = vpop.f32.mrf.mxu0 }
  0xb0   :  { %v586_v38 = vadd.f32 %v585_v36, %v156_v35  ;;  %v576_v20 = vadd.f32 %v575_v37, %v156_v35 }
  0xb2   :  { %839 = vst [vmem:[#allocation8 + $0x60] sm:$0xff] %v586_v38  ;;  %729 = vmatmul.bf16.gmra.mxu1 %v1566_v7  ;;  %816 = vmatmul.bf16.gmra.mxu0 %v1566_v7 }
  0xb3   :  { %827 = vst [vmem:[#allocation8] sm:$0xff] %v576_v20 }
  0xb5   :  { %821 = vmatmul.bf16.vlgmr.msra.gmra.mxu2 %v1574_v2 }
  0xb7   :  { %v587_v40 = vpop.f32.mrf.mxu1  ;;  %v577_v42 = vpop.f32.mrf.mxu0 }
  0xb8   :  { %v633_v39 = vpop.f32.mrf.mxu2  ;;  %v588_v43 = vadd.f32 %v587_v40, %v156_v35  ;;  %v578_v44 = vadd.f32 %v577_v42, %v156_v35  ;;  %v1651_v42 = vperm.slane %v1605_v34, 6 }
  0xb9   :  { %v634_v41 = vadd.f32 %v633_v39, %v1613_v5 }
  0xba   :  { %842 = vst [vmem:[#allocation8 + $0x78] sm:$0xff] %v588_v43 }
  0xbb   :  { %829 = vst [vmem:[#allocation8 + $0x10] sm:$0xff] %v634_v41 }
  0xbc   :  { %830 = vst [vmem:[#allocation8 + $0x18] sm:$0xff] %v578_v44  ;;  %v662_v7 = vpop.f32.mrf.mxu3 }
  0xbd   :  { %v663_v47 = vadd.f32 %v662_v7, %v1617_v45 }
  0xbf   :  { %v590_v48 = vpop.f32.mrf.mxu1  ;;  %v580_v50 = vpop.f32.mrf.mxu0  ;;  %851 = vst [vmem:[#allocation9] sm:$0xff] %v663_v47 }
  0xc0   :  { %v635_v46 = vpop.f32.mrf.mxu2  ;;  %v591_v51 = vadd.f32 %v590_v48, %v156_v35  ;;  %v581_v52 = vadd.f32 %v580_v50, %v156_v35  ;;  %v1658_v50 = vperm.slane %v1605_v34, 7 }
  0xc1   :  { %v636_v49 = vadd.f32 %v635_v46, %v1613_v5 }
  0xc2   :  { %845 = vst [vmem:[#allocation8 + $0x90] sm:$0xff] %v591_v51  ;;  %734 = vmatmul.bf16.gmra.mxu1 %v1574_v2  ;;  %v1628_v2 = vperm.slane %v1605_v34, 4 }
  0xc3   :  { %832 = vst [vmem:[#allocation8 + $0x28] sm:$0xff] %v636_v49 }
  0xc4   :  { %833 = vst [vmem:[#allocation8 + $0x30] sm:$0xff] %v581_v52  ;;  %v664_v53 = vpop.f32.mrf.mxu3 }
  0xc5   :  { %v665_v55 = vadd.f32 %v664_v53, %v1617_v45 }
  0xc7   :  { %v592_v56 = vpop.f32.mrf.mxu1  ;;  %v582_v58 = vpop.f32.mrf.mxu0  ;;  %854 = vst [vmem:[#allocation9 + $0x18] sm:$0xff] %v665_v55 }
  0xc8   :  { %v638_v54 = vpop.f32.mrf.mxu2  ;;  %v593_v59 = vadd.f32 %v592_v56, %v156_v35  ;;  %v583_v60 = vadd.f32 %v582_v58, %v156_v35 }
  0xc9   :  { %v639_v57 = vadd.f32 %v638_v54, %v1613_v5 }
  0xca   :  { %848 = vst [vmem:[#allocation8 + $0xa8] sm:$0xff] %v593_v59 }
  0xcb   :  { %835 = vst [vmem:[#allocation8 + $0x40] sm:$0xff] %v639_v57 }
  0xcc   :  { %836 = vst [vmem:[#allocation8 + $0x48] sm:$0xff] %v583_v60  ;;  %v667_v62 = vpop.f32.mrf.mxu3 }
  0xcd   :  { %v668_v0 = vadd.f32 %v667_v62, %v1617_v45 }
  0xcf   :  { %v604_v1 = vpop.f32.mrf.mxu1  ;;  %v691_v4 = vpop.f32.mrf.mxu0  ;;  %857 = vst [vmem:[#allocation9 + $0x30] sm:$0xff] %v668_v0 }
  0xd0   :  { %v640_v63 = vpop.f32.mrf.mxu2  ;;  %v605_v6 = vadd.f32 %v604_v1, %v1625_v61  ;;  %v692_v8 = vadd.f32 %v691_v4, %v1628_v2  ;;  %v1675_v4 = vperm.slane %v1605_v34, 5 }
  0xd1   :  { %v641_v3 = vadd.f32 %v640_v63, %v1613_v5 }
  0xd2   :  { %828 = vst [vmem:[#allocation8 + $0x8] sm:$0xff] %v605_v6  ;;  %v1677_v6 = vld [vmem:[#allocation7 + $0x8] ss:$0 sm:$0xff] }
  0xd3   :  { %838 = vst [vmem:[#allocation8 + $0x58] sm:$0xff] %v641_v3 }
  0xd4   :  { %852 = vst [vmem:[#allocation9 + $0x8] sm:$0xff] %v692_v8  ;;  %v669_v9 = vpop.f32.mrf.mxu3 }
  0xd5   :  { %v670_v11 = vadd.f32 %v669_v9, %v1617_v45 }
  0xd7   :  { %v606_v12 = vpop.f32.mrf.mxu1  ;;  %v693_v14 = vpop.f32.mrf.mxu0  ;;  %860 = vst [vmem:[#allocation9 + $0x48] sm:$0xff] %v670_v11 }
  0xd8   :  { %v643_v10 = vpop.f32.mrf.mxu2  ;;  %v607_v15 = vadd.f32 %v606_v12, %v1625_v61  ;;  %v694_v16 = vadd.f32 %v693_v14, %v1628_v2 }
  0xd9   :  { %v644_v13 = vadd.f32 %v643_v10, %v1613_v5 }
  0xda   :  { %831 = vst [vmem:[#allocation8 + $0x20] sm:$0xff] %v607_v15 }
  0xdb   :  { %841 = vst [vmem:[#allocation8 + $0x70] sm:$0xff] %v644_v13 }
  0xdc   :  { %855 = vst [vmem:[#allocation9 + $0x20] sm:$0xff] %v694_v16  ;;  %v672_v17 = vpop.f32.mrf.mxu3 }
  0xdd   :  { %v673_v19 = vadd.f32 %v672_v17, %v1617_v45 }
  0xdf   :  { %v609_v21 = vpop.f32.mrf.mxu1  ;;  %v696_v23 = vpop.f32.mrf.mxu0  ;;  %863 = vst [vmem:[#allocation9 + $0x60] sm:$0xff] %v673_v19 }
  0xe0   :  { %v645_v18 = vpop.f32.mrf.mxu2  ;;  %v610_v24 = vadd.f32 %v609_v21, %v1625_v61  ;;  %v697_v25 = vadd.f32 %v696_v23, %v1628_v2 }
  0xe1   :  { %v646_v22 = vadd.f32 %v645_v18, %v1613_v5 }
  0xe2   :  { %834 = vst [vmem:[#allocation8 + $0x38] sm:$0xff] %v610_v24 }
  0xe3   :  { %844 = vst [vmem:[#allocation8 + $0x88] sm:$0xff] %v646_v22 }
  0xe4   :  { %858 = vst [vmem:[#allocation9 + $0x38] sm:$0xff] %v697_v25  ;;  %v674_v26 = vpop.f32.mrf.mxu3 }
  0xe5   :  { %v675_v28 = vadd.f32 %v674_v26, %v1617_v45 }
  0xe7   :  { %v611_v29 = vpop.f32.mrf.mxu1  ;;  %v698_v31 = vpop.f32.mrf.mxu0  ;;  %866 = vst [vmem:[#allocation9 + $0x78] sm:$0xff] %v675_v28 }
  0xe8   :  { %v648_v27 = vpop.f32.mrf.mxu2  ;;  %v612_v32 = vadd.f32 %v611_v29, %v1625_v61  ;;  %v699_v33 = vadd.f32 %v698_v31, %v1628_v2 }
  0xe9   :  { %v649_v30 = vadd.f32 %v648_v27, %v1613_v5 }
  0xea   :  { %837 = vst [vmem:[#allocation8 + $0x50] sm:$0xff] %v612_v32 }
  0xeb   :  { %847 = vst [vmem:[#allocation8 + $0xa0] sm:$0xff] %v649_v30 }
  0xec   :  { %861 = vst [vmem:[#allocation9 + $0x50] sm:$0xff] %v699_v33  ;;  %v677_v35 = vpop.f32.mrf.mxu3 }
  0xed   :  { %v678_v37 = vadd.f32 %v677_v35, %v1617_v45 }
  0xef   :  { %v614_v38 = vpop.f32.mrf.mxu1  ;;  %v701_v39 = vpop.f32.mrf.mxu0  ;;  %869 = vst [vmem:[#allocation9 + $0x90] sm:$0xff] %v678_v37 }
  0xf0   :  { %v650_v36 = vpop.f32.mrf.mxu2  ;;  %v615_v40 = vadd.f32 %v614_v38, %v1625_v61  ;;  %v702_v41 = vadd.f32 %v701_v39, %v1628_v2 }
  0xf1   :  { %v651_v20 = vadd.f32 %v650_v36, %v1613_v5 }
  0xf2   :  { %840 = vst [vmem:[#allocation8 + $0x68] sm:$0xff] %v615_v40 }
  0xf3   :  { %850 = vst [vmem:[#allocation8 + $0xb8] sm:$0xff] %v651_v20 }
  0xf4   :  { %864 = vst [vmem:[#allocation9 + $0x68] sm:$0xff] %v702_v41  ;;  %v679_v43 = vpop.f32.mrf.mxu3 }
  0xf5   :  { %v680_v7 = vadd.f32 %v679_v43, %v1617_v45 }
  0xf7   :  { %v616_v46 = vpop.f32.mrf.mxu1  ;;  %v703_v5 = vpop.f32.mrf.mxu0  ;;  %872 = vst [vmem:[#allocation9 + $0xa8] sm:$0xff] %v680_v7 }
  0xf8   :  { %v749_v44 = vpop.f32.mrf.mxu2  ;;  %v617_v48 = vadd.f32 %v616_v46, %v1625_v61  ;;  %v704_v49 = vadd.f32 %v703_v5, %v1628_v2 }
  0xf9   :  { %v750_v47 = vadd.f32 %v749_v44, %v1651_v42 }
  0xfa   :  { %843 = vst [vmem:[#allocation8 + $0x80] sm:$0xff] %v617_v48 }
  0xfb   :  { %875 = vst [vmem:[#allocation11] sm:$0xff] %v750_v47 }
  0xfc   :  { %867 = vst [vmem:[#allocation9 + $0x80] sm:$0xff] %v704_v49  ;;  %v778_v51 = vpop.f32.mrf.mxu3 }
  0xfd   :  { %v779_v53 = vadd.f32 %v778_v51, %v1658_v50 }
  0xff   :  { %v619_v45 = vpop.f32.mrf.mxu1  ;;  %v706_v55 = vpop.f32.mrf.mxu0  ;;  %876 = vst [vmem:[#allocation11 + $0x8] sm:$0xff] %v779_v53 }
 0x100   :  { %v751_v52 = vpop.f32.mrf.mxu2  ;;  %v620_v56 = vadd.f32 %v619_v45, %v1625_v61  ;;  %v707_v57 = vadd.f32 %v706_v55, %v1628_v2 }
 0x101   :  { %v752_v54 = vadd.f32 %v751_v52, %v1651_v42 }
 0x102   :  { %846 = vst [vmem:[#allocation8 + $0x98] sm:$0xff] %v620_v56 }
 0x103   :  { %878 = vst [vmem:[#allocation11 + $0x18] sm:$0xff] %v752_v54 }
 0x104   :  { %870 = vst [vmem:[#allocation9 + $0x98] sm:$0xff] %v707_v57  ;;  %v780_v58 = vpop.f32.mrf.mxu3 }
 0x105   :  { %v781_v60 = vadd.f32 %v780_v58, %v1658_v50 }
 0x107   :  { %v621_v62 = vpop.f32.mrf.mxu1  ;;  %v708_v0 = vpop.f32.mrf.mxu0  ;;  %879 = vst [vmem:[#allocation11 + $0x20] sm:$0xff] %v781_v60 }
 0x108   :  { %v754_v59 = vpop.f32.mrf.mxu2  ;;  %v622_v1 = vadd.f32 %v621_v62, %v1625_v61  ;;  %v709_v3 = vadd.f32 %v708_v0, %v1628_v2 }
 0x109   :  { %v755_v63 = vadd.f32 %v754_v59, %v1651_v42 }
 0x10a   :  { %849 = vst [vmem:[#allocation8 + $0xb0] sm:$0xff] %v622_v1 }
 0x10b   :  { %881 = vst [vmem:[#allocation11 + $0x30] sm:$0xff] %v755_v63  ;;  %911 = dma.vmem_to_hbm [thread:$0]  %s904_s2, 3072, %s906_s13, [#allocation4], %s1523_s14, %s1523_s14, %s1524_s15  }
 0x10c   :  { %873 = vst [vmem:[#allocation9 + $0xb0] sm:$0xff] %v709_v3  ;;  %v783_v61 = vpop.f32.mrf.mxu3 }
 0x10d   :  { %v784_v2 = vadd.f32 %v783_v61, %v1658_v50 }
 0x10f   :  { %v720_v9 = vpop.f32.mrf.mxu1  ;;  %v807_v11 = vpop.f32.mrf.mxu0  ;;  %882 = vst [vmem:[#allocation11 + $0x38] sm:$0xff] %v784_v2 }
 0x110   :  { %v756_v8 = vpop.f32.mrf.mxu2  ;;  %v721_v12 = vadd.f32 %v720_v9, %v1675_v4  ;;  %v808_v13 = vadd.f32 %v1677_v6, %v807_v11 }
 0x111   :  { %v757_v10 = vadd.f32 %v756_v8, %v1651_v42 }
 0x112   :  { %853 = vst [vmem:[#allocation9 + $0x10] sm:$0xff] %v721_v12 }
 0x113   :  { %884 = vst [vmem:[#allocation11 + $0x48] sm:$0xff] %v757_v10 }
 0x114   :  { %877 = vst [vmem:[#allocation11 + $0x10] sm:$0xff] %v808_v13  ;;  %v785_v34 = vpop.f32.mrf.mxu3 }
 0x115   :  { %v786_v15 = vadd.f32 %v785_v34, %v1658_v50 }
 0x117   :  { %v722_v16 = vpop.f32.mrf.mxu1  ;;  %v809_v18 = vpop.f32.mrf.mxu0  ;;  %885 = vst [vmem:[#allocation11 + $0x50] sm:$0xff] %v786_v15 }
 0x118   :  { %v759_v14 = vpop.f32.mrf.mxu2  ;;  %v723_v19 = vadd.f32 %v722_v16, %v1675_v4  ;;  %v810_v21 = vadd.f32 %v1677_v6, %v809_v18 }
 0x119   :  { %v760_v17 = vadd.f32 %v759_v14, %v1651_v42 }
 0x11a   :  { %856 = vst [vmem:[#allocation9 + $0x28] sm:$0xff] %v723_v19 }
 0x11b   :  { %887 = vst [vmem:[#allocation11 + $0x60] sm:$0xff] %v760_v17 }
 0x11c   :  { %880 = vst [vmem:[#allocation11 + $0x28] sm:$0xff] %v810_v21  ;;  %v788_v22 = vpop.f32.mrf.mxu3 }
 0x11d   :  { %v789_v24 = vadd.f32 %v788_v22, %v1658_v50 }
 0x11f   :  { %v725_v25 = vpop.f32.mrf.mxu1  ;;  %v812_v27 = vpop.f32.mrf.mxu0  ;;  %888 = vst [vmem:[#allocation11 + $0x68] sm:$0xff] %v789_v24 }
 0x120   :  { %v761_v23 = vpop.f32.mrf.mxu2  ;;  %v726_v28 = vadd.f32 %v725_v25, %v1675_v4  ;;  %v813_v29 = vadd.f32 %v1677_v6, %v812_v27 }
 0x121   :  { %v762_v26 = vadd.f32 %v761_v23, %v1651_v42 }
 0x122   :  { %859 = vst [vmem:[#allocation9 + $0x40] sm:$0xff] %v726_v28 }
 0x123   :  { %890 = vst [vmem:[#allocation11 + $0x78] sm:$0xff] %v762_v26 }
 0x124   :  { %883 = vst [vmem:[#allocation11 + $0x40] sm:$0xff] %v813_v29  ;;  %v790_v30 = vpop.f32.mrf.mxu3 }
 0x125   :  { %v791_v32 = vadd.f32 %v790_v30, %v1658_v50 }
 0x127   :  { %v727_v33 = vpop.f32.mrf.mxu1  ;;  %v814_v36 = vpop.f32.mrf.mxu0  ;;  %891 = vst [vmem:[#allocation11 + $0x80] sm:$0xff] %v791_v32 }
 0x128   :  { %v764_v31 = vpop.f32.mrf.mxu2  ;;  %v728_v37 = vadd.f32 %v727_v33, %v1675_v4  ;;  %v815_v38 = vadd.f32 %v1677_v6, %v814_v36 }
 0x129   :  { %v765_v35 = vadd.f32 %v764_v31, %v1651_v42 }
 0x12a   :  { %862 = vst [vmem:[#allocation9 + $0x58] sm:$0xff] %v728_v37 }
 0x12b   :  { %893 = vst [vmem:[#allocation11 + $0x90] sm:$0xff] %v765_v35 }
 0x12c   :  { %886 = vst [vmem:[#allocation11 + $0x58] sm:$0xff] %v815_v38  ;;  %v793_v20 = vpop.f32.mrf.mxu3 }
 0x12d   :  { %v794_v40 = vadd.f32 %v793_v20, %v1658_v50 }
 0x12f   :  { %v730_v41 = vpop.f32.mrf.mxu1  ;;  %v817_v44 = vpop.f32.mrf.mxu0  ;;  %894 = vst [vmem:[#allocation11 + $0x98] sm:$0xff] %v794_v40 }
 0x130   :  { %v766_v39 = vpop.f32.mrf.mxu2  ;;  %v731_v7 = vadd.f32 %v730_v41, %v1675_v4  ;;  %v818_v46 = vadd.f32 %v1677_v6, %v817_v44 }
 0x131   :  { %v767_v43 = vadd.f32 %v766_v39, %v1651_v42 }
 0x132   :  { %865 = vst [vmem:[#allocation9 + $0x70] sm:$0xff] %v731_v7 }
 0x133   :  { %896 = vst [vmem:[#allocation11 + $0xa8] sm:$0xff] %v767_v43 }
 0x134   :  { %889 = vst [vmem:[#allocation11 + $0x70] sm:$0xff] %v818_v46  ;;  %v795_v47 = vpop.f32.mrf.mxu3 }
 0x135   :  { %v796_v48 = vadd.f32 %v795_v47, %v1658_v50 }
 0x137   :  { %v732_v49 = vpop.f32.mrf.mxu1  ;;  %v819_v52 = vpop.f32.mrf.mxu0  ;;  %897 = vst [vmem:[#allocation11 + $0xb0] sm:$0xff] %v796_v48 }
 0x138   :  { %v822_v5 = vpop.f32.mrf.mxu2  ;;  %v733_v53 = vadd.f32 %v732_v49, %v1675_v4  ;;  %v820_v42 = vadd.f32 %v1677_v6, %v819_v52 }
 0x139   :  { %v823_v51 = vadd.f32 %v1677_v6, %v822_v5 }
 0x13a   :  { %868 = vst [vmem:[#allocation9 + $0x88] sm:$0xff] %v733_v53 }
 0x13b   :  { %895 = vst [vmem:[#allocation11 + $0xa0] sm:$0xff] %v823_v51 }
 0x13c   :  { %892 = vst [vmem:[#allocation11 + $0x88] sm:$0xff] %v820_v42 }
 0x13f   :  { %v735_v54 = vpop.f32.mrf.mxu1 }
 0x140   :  { %v824_v45 = vpop.f32.mrf.mxu2  ;;  %v736_v56 = vadd.f32 %v735_v54, %v1675_v4 }
 0x141   :  { %v825_v55 = vadd.f32 %v1677_v6, %v824_v45 }
 0x142   :  { %871 = vst [vmem:[#allocation9 + $0xa0] sm:$0xff] %v736_v56 }
 0x143   :  { %898 = vst [vmem:[#allocation11 + $0xb8] sm:$0xff] %v825_v55 }
 0x147   :  { %v737_v50 = vpop.f32.mrf.mxu1 }
 0x148   :  { %v738_v57 = vadd.f32 %v737_v50, %v1675_v4 }
 0x14a   :  { %874 = vst [vmem:[#allocation9 + $0xb8] sm:$0xff] %v738_v57 }
 0x14b   :  { %924 = dma.vmem_to_hbm [thread:$0]  %s917_s16, 3072, %s919_s19, [#allocation10], %s1523_s14, %s1523_s14, %s1524_s15  }
 0x14c   :  { %937 = dma.vmem_to_hbm [thread:$0]  %s930_s21, 3072, %s932_s24, [#allocation10], %s1523_s14, %s1523_s14, %s1524_s15  }
 0x14d   :  { %1511 = dma.done.wait [#allocation4], 3072  }
 0x14e   :  { %1512 = vsyncadd [#allocation4], 4294964224 }
 0x14f   :  { %1513 = dma.done.wait [#allocation10], 6144  }
 0x150   :  { %1514 = vsyncadd [#allocation10], 4294961152 }
 0x151   :  { %950 = vsyncpa [#allocation3], 1 }
 0x152   :  { %951 = vsyncpa [#allocation6], 1 }
 0x153   :  { %952 = vsyncpa [#allocation4], 1 }
 0x154   :  { %953 = vsyncpa [#allocation10], 1 }

</bundles_post_ra>
